<compile_context>
chip_gen: v5e
topology: v5e:2x2
jax: 0.10.0
libtpu: 0.0.40
codegen_flags: <defaults>
</compile_context>

<pallas_src>
import math

import jax
import jax.numpy as jnp
from jax import lax
from jax.experimental import pallas as pl
from jax.experimental.pallas import tpu as pltpu

_LANE = 128
_SUBLANE = 8
_CHUNK_ROWS = 512      # in-kernel row chunk (bounds f32 temps to ~0.25 MiB each)


def _make_masked_l1_kernel(tile_rows, chunk_rows, nonneg_masks):
    """Kernel: accumulate per-lane partial sums of the two masked-L1 terms."""
    n_chunks = tile_rows // chunk_rows
    sub_blocks = chunk_rows // _SUBLANE

    def kernel(a_ref, b_ref, f_ref, ma_ref, mb_ref, o_ref, acc_a, acc_b):
        s = pl.program_id(1)

        @pl.when(s == 0)
        def _init():
            acc_a[...] = jnp.zeros_like(acc_a)
            acc_b[...] = jnp.zeros_like(acc_b)

        def chunk_body(c, carry):
            r = pl.multiple_of(c * chunk_rows, chunk_rows)
            sl = pl.ds(r, chunk_rows)
            # Native-dtype loads; upcast after the DMA (cast hides under DMA).
            f = f_ref[sl, :].astype(jnp.float32)
            a = a_ref[sl, :].astype(jnp.float32)
            b = b_ref[sl, :].astype(jnp.float32)
            ma = ma_ref[sl, :].astype(jnp.float32)
            mb = mb_ref[sl, :].astype(jnp.float32)
            if nonneg_masks:
                da = ma * jnp.abs(f - a)
                db = mb * jnp.abs(f - b)
            else:
                # Exact arithmetic form of the reference.
                da = jnp.abs(f * ma - a * ma)
                db = jnp.abs(f * mb - b * mb)
            # Full-vreg accumulation: reduce (chunk_rows,128) -> (8,128) with
            # plain VPU adds (reshape matches the native (8,128) tiling).
            acc_a[...] += da.reshape(sub_blocks, _SUBLANE, _LANE).sum(axis=0)
            acc_b[...] += db.reshape(sub_blocks, _SUBLANE, _LANE).sum(axis=0)
            return carry

        lax.fori_loop(0, n_chunks, chunk_body, 0, unroll=True)

        @pl.when(s == pl.num_programs(1) - 1)
        def _store():
            o_ref[0] = acc_a[...]
            o_ref[1] = acc_b[...]

    return kernel


def _masked_l1_sums_xla(a, b, f, ma, mb):
    """Tiny XLA-side reduction used for the ragged row tail."""
    a = a.astype(jnp.float32)
    b = b.astype(jnp.float32)
    f = f.astype(jnp.float32)
    ma = ma.astype(jnp.float32)
    mb = mb.astype(jnp.float32)
    sa = jnp.sum(jnp.abs(f * ma - a * ma))
    sb = jnp.sum(jnp.abs(f * mb - b * mb))
    return sa, sb


def l_intensity_grandfu(image_A, image_B, image_fused, gradient_A_Mask,
                        gradient_B_Mask, *, tile_rows_max=4096,
                        num_parallel_chunks=None, assume_nonneg_masks=False):
    """Forward pass of L_Intensity_GrandFu."""
    tensors = (image_A, image_B, image_fused, gradient_A_Mask, gradient_B_Mask)
    shape = jnp.broadcast_shapes(*(t.shape for t in tensors))
    # TODO(synk): if the two l1_loss terms broadcast to *different* shapes in
    # the reference, their means would use different denominators; here all
    # five tensors are broadcast to one common shape (typical usage: identical
    # NCHW shapes, in which case no broadcast copy is made).
    n = math.prod(shape)

    def prep(x):
        if tuple(x.shape) != tuple(shape):
            x = jnp.broadcast_to(x, shape)      # copy only if actually needed
        return x.reshape(-1)                    # free for contiguous inputs

    flats = [prep(t) for t in tensors]

    if n % _LANE:
        # Rare fallback: lane-align with a small zero pad so the flat array can
        # be viewed as (rows, 128).  Zeros contribute 0 to both sums.  Typical
        # image shapes have n % 128 == 0 and take the zero-copy path.
        pad = _LANE - (n % _LANE)
        flats = [jnp.pad(x, (0, pad)) for x in flats]

    rows = flats[0].shape[0] // _LANE
    x2d = [x.reshape(rows, _LANE) for x in flats]

    # Tile selection: tile_rows is a multiple of 8 (and of the in-kernel chunk
    # when large).  We never pad rows up to a tile multiple -- the leftover
    # rows are reduced in tiny XLA glue below.
    tile_rows_max = max(_SUBLANE, (int(tile_rows_max) // _SUBLANE) * _SUBLANE)
    tile_rows = min(tile_rows_max, (rows // _SUBLANE) * _SUBLANE)
    if tile_rows >= _CHUNK_ROWS:
        tile_rows = (tile_rows // _CHUNK_ROWS) * _CHUNK_ROWS
        chunk_rows = _CHUNK_ROWS
    else:
        chunk_rows = tile_rows

    sum_a = jnp.float32(0.0)
    sum_b = jnp.float32(0.0)
    rows_main = 0

    if tile_rows > 0:
        if num_parallel_chunks is None:
            # Use the second TensorCore (v7x) whenever there are >= 2 tiles of
            # work; on 1-TC chips the extra chunk is just sequential (harmless).
            np_chunks = 2 if rows >= 2 * tile_rows else 1
        else:
            np_chunks = max(1, int(num_parallel_chunks))
        ns = rows // (np_chunks * tile_rows)
        if ns == 0:            # user-forced chunking too aggressive for input
            np_chunks = 1
            ns = rows // tile_rows
        rows_main = np_chunks * ns * tile_rows

        kernel = _make_masked_l1_kernel(tile_rows, chunk_rows,
                                        bool(assume_nonneg_masks))
        in_spec = pl.BlockSpec((tile_rows, _LANE),
                               lambda p, s, ns=ns: (p * ns + s, 0))
        out = pl.pallas_call(
            kernel,
            out_shape=jax.ShapeDtypeStruct((2, np_chunks * _SUBLANE, _LANE),
                                           jnp.float32),
            grid=(np_chunks, ns),
            in_specs=[in_spec] * 5,
            out_specs=pl.BlockSpec((2, _SUBLANE, _LANE),
                                   lambda p, s: (0, p, 0)),
            scratch_shapes=[pltpu.VMEM((_SUBLANE, _LANE), jnp.float32),
                            pltpu.VMEM((_SUBLANE, _LANE), jnp.float32)],
            compiler_params=pltpu.CompilerParams(
                dimension_semantics=("parallel", "arbitrary"),
                vmem_limit_bytes=48 * 1024 * 1024),
        )(*x2d)
        sum_a = jnp.sum(out[0])
        sum_b = jnp.sum(out[1])

    if rows_main < rows:
        # Ragged row tail (< one grid's worth of rows): reduce in XLA instead
        # of padding all five tensors up to a tile multiple.
        ta, tb = _masked_l1_sums_xla(*(x[rows_main:] for x in x2d))
        sum_a = sum_a + ta
        sum_b = sum_b + tb

    inv_n = jnp.float32(1.0 / float(n))
    return sum_a * inv_n + sum_b * inv_n


def _reference(image_A, image_B, image_fused, ma, mb):
    a = image_A.astype(jnp.float32)
    b = image_B.astype(jnp.float32)
    f = image_fused.astype(jnp.float32)
    ma = ma.astype(jnp.float32)
    mb = mb.astype(jnp.float32)
    loss_a = jnp.mean(jnp.abs(f * ma - a * ma))
    loss_b = jnp.mean(jnp.abs(f * mb - b * mb))
    return loss_a + loss_b


if __name__ == "__main__":
    key = jax.random.PRNGKey(0)
    k1, k2, k3, k4, k5 = jax.random.split(key, 5)
    B, C, H, W = 2, 4, 16, 16
    image_A = jax.random.uniform(k1, (B, C, H, W), jnp.float32)
    image_B = jax.random.uniform(k2, (B, C, H, W), jnp.float32)
    image_fused = jax.random.uniform(k3, (B, C, H, W), jnp.float32)
    maskA = jax.random.uniform(k4, (B, C, H, W), jnp.float32)
    maskB = jax.random.uniform(k5, (B, C, H, W), jnp.float32)

    ref = _reference(image_A, image_B, image_fused, maskA, maskB)

    # Default path (single tile, grid=(1,1)).
    loss = l_intensity_grandfu(image_A, image_B, image_fused, maskA, maskB)
    loss = jax.block_until_ready(loss)
    assert loss.shape == () and bool(jnp.isfinite(loss))
    assert jnp.allclose(loss, ref, rtol=1e-5, atol=1e-6)

    # Multi-step accumulator path (grid=(1,2)).
    loss_acc = l_intensity_grandfu(image_A, image_B, image_fused, maskA, maskB,
                                   tile_rows_max=8, num_parallel_chunks=1)
    # Parallel-chunk path (grid=(2,1)).
    loss_par = l_intensity_grandfu(image_A, image_B, image_fused, maskA, maskB,
                                   tile_rows_max=8, num_parallel_chunks=2)
    jax.block_until_ready((loss_acc, loss_par))
    assert jnp.allclose(loss_acc, ref, rtol=1e-5, atol=1e-6)
    assert jnp.allclose(loss_par, ref, rtol=1e-5, atol=1e-6)

    # Native bf16 inputs: kernel reads bf16 and upcasts in-body.
    bf = [x.astype(jnp.bfloat16) for x in
          (image_A, image_B, image_fused, maskA, maskB)]
    ref_bf = _reference(*bf)
    loss_bf = jax.block_until_ready(l_intensity_grandfu(*bf))
    assert jnp.allclose(loss_bf, ref_bf, rtol=1e-4, atol=1e-5)

    # Ragged-rows path: 2*3*16*16 = 1536 elems -> 12 rows, tile_rows=8, so the
    # kernel covers 8 rows and the 4 leftover rows go through the XLA tail.
    j1, j2, j3, j4, j5 = jax.random.split(jax.random.PRNGKey(1), 5)
    rA = jax.random.uniform(j1, (2, 3, 16, 16), jnp.float32)
    rB = jax.random.uniform(j2, (2, 3, 16, 16), jnp.float32)
    rF = jax.random.uniform(j3, (2, 3, 16, 16), jnp.float32)
    rMA = jax.random.uniform(j4, (2, 3, 16, 16), jnp.float32)
    rMB = jax.random.uniform(j5, (2, 3, 16, 16), jnp.float32)
    ref_r = _reference(rA, rB, rF, rMA, rMB)
    loss_r = jax.block_until_ready(
        l_intensity_grandfu(rA, rB, rF, rMA, rMB, tile_rows_max=8))
    assert jnp.allclose(loss_r, ref_r, rtol=1e-5, atol=1e-6)

    print("KERNEL_OK")
</pallas_src>

<mosaic_0001>
module attributes {stable_mosaic.version = 11 : i64} {
  func.func @kernel(%arg0: i32, %arg1: i32, %arg2: memref<16x128xf32, #tpu.memory_space<vmem>>, %arg3: memref<16x128xf32, #tpu.memory_space<vmem>>, %arg4: memref<16x128xf32, #tpu.memory_space<vmem>>, %arg5: memref<16x128xf32, #tpu.memory_space<vmem>>, %arg6: memref<16x128xf32, #tpu.memory_space<vmem>>, %arg7: memref<2x8x128xf32, #tpu.memory_space<vmem>>, %arg8: memref<8x128xf32, #tpu.memory_space<vmem>>, %arg9: memref<8x128xf32, #tpu.memory_space<vmem>>) attributes {dimension_semantics = [#tpu.dimension_semantics<parallel>, #tpu.dimension_semantics<arbitrary>], iteration_bounds = array<i64: 1, 1>, scalar_prefetch = 0 : i64, scratch_operands = 2 : i64, tpu.core_type = #tpu.core_type<tc>, window_params = [{transform_indices = @transform_0, window_bounds = array<i64: 16, 128>}, {transform_indices = @transform_1, window_bounds = array<i64: 16, 128>}, {transform_indices = @transform_2, window_bounds = array<i64: 16, 128>}, {transform_indices = @transform_3, window_bounds = array<i64: 16, 128>}, {transform_indices = @transform_4, window_bounds = array<i64: 16, 128>}, {transform_indices = @transform_5, window_bounds = array<i64: 2, 8, 128>}]} {
    %c0_i32 = arith.constant 0 : i32
    %0 = arith.cmpi eq, %arg1, %c0_i32 : i32
    %1 = arith.extui %0 : i1 to i32
    %c0_i32_0 = arith.constant 0 : i32
    %2 = arith.cmpi ne, %1, %c0_i32_0 : i32
    scf.if %2 {
      %cst_17 = arith.constant 0.000000e+00 : f32
      %36 = vector.broadcast %cst_17 : f32 to vector<8x128xf32>
      %c0_18 = arith.constant 0 : index
      %c0_19 = arith.constant 0 : index
      %37 = vector.load %arg8[%c0_18, %c0_19] : memref<8x128xf32, #tpu.memory_space<vmem>>, vector<8x128xf32>
      tpu.vector_store %arg8[%c0_18, %c0_19], %36 {strides = array<i32>} : memref<8x128xf32, #tpu.memory_space<vmem>>, vector<8x128xf32>,
      %cst_20 = arith.constant 0.000000e+00 : f32
      %38 = vector.broadcast %cst_20 : f32 to vector<8x128xf32>
      %c0_21 = arith.constant 0 : index
      %c0_22 = arith.constant 0 : index
      %39 = vector.load %arg9[%c0_21, %c0_22] : memref<8x128xf32, #tpu.memory_space<vmem>>, vector<8x128xf32>
      tpu.vector_store %arg9[%c0_21, %c0_22], %38 {strides = array<i32>} : memref<8x128xf32, #tpu.memory_space<vmem>>, vector<8x128xf32>,
    } else {
    }
    %c0_i32_1 = arith.constant 0 : i32
    %c16_i32 = arith.constant 16 : i32
    %3 = arith.muli %c0_i32_1, %c16_i32 : i32
    %4 = tpu.assume_multiple %3, 16 : i32
    %5 = arith.index_cast %4 : i32 to index
    %c0 = arith.constant 0 : index
    %6 = vector.load %arg4[%5, %c0] : memref<16x128xf32, #tpu.memory_space<vmem>>, vector<16x128xf32>
    %7 = arith.index_cast %4 : i32 to index
    %c0_2 = arith.constant 0 : index
    %8 = vector.load %arg2[%7, %c0_2] : memref<16x128xf32, #tpu.memory_space<vmem>>, vector<16x128xf32>
    %9 = arith.index_cast %4 : i32 to index
    %c0_3 = arith.constant 0 : index
    %10 = vector.load %arg3[%9, %c0_3] : memref<16x128xf32, #tpu.memory_space<vmem>>, vector<16x128xf32>
    %11 = arith.index_cast %4 : i32 to index
    %c0_4 = arith.constant 0 : index
    %12 = vector.load %arg5[%11, %c0_4] : memref<16x128xf32, #tpu.memory_space<vmem>>, vector<16x128xf32>
    %13 = arith.index_cast %4 : i32 to index
    %c0_5 = arith.constant 0 : index
    %14 = vector.load %arg6[%13, %c0_5] : memref<16x128xf32, #tpu.memory_space<vmem>>, vector<16x128xf32>
    %15 = arith.mulf %6, %12 : vector<16x128xf32>
    %16 = arith.mulf %8, %12 : vector<16x128xf32>
    %17 = arith.subf %15, %16 : vector<16x128xf32>
    %18 = math.absf %17 : vector<16x128xf32>
    %19 = arith.mulf %6, %14 : vector<16x128xf32>
    %20 = arith.mulf %10, %14 : vector<16x128xf32>
    %21 = arith.subf %19, %20 : vector<16x128xf32>
    %22 = math.absf %21 : vector<16x128xf32>
    %c0_6 = arith.constant 0 : index
    %c0_7 = arith.constant 0 : index
    %23 = vector.load %arg8[%c0_6, %c0_7] : memref<8x128xf32, #tpu.memory_space<vmem>>, vector<8x128xf32>
    %24 = vector.shape_cast %18 : vector<16x128xf32> to vector<2x8x128xf32>
    %cst = arith.constant dense<0.000000e+00> : vector<8x128xf32>
    %25 = vector.multi_reduction <add>, %24, %cst [0] : vector<2x8x128xf32> to vector<8x128xf32>
    %26 = arith.addf %23, %25 : vector<8x128xf32>
    %c0_8 = arith.constant 0 : index
    %c0_9 = arith.constant 0 : index
    %27 = vector.load %arg8[%c0_8, %c0_9] : memref<8x128xf32, #tpu.memory_space<vmem>>, vector<8x128xf32>
    tpu.vector_store %arg8[%c0_8, %c0_9], %26 {strides = array<i32>} : memref<8x128xf32, #tpu.memory_space<vmem>>, vector<8x128xf32>,
    %c0_10 = arith.constant 0 : index
    %c0_11 = arith.constant 0 : index
    %28 = vector.load %arg9[%c0_10, %c0_11] : memref<8x128xf32, #tpu.memory_space<vmem>>, vector<8x128xf32>
    %29 = vector.shape_cast %22 : vector<16x128xf32> to vector<2x8x128xf32>
    %cst_12 = arith.constant dense<0.000000e+00> : vector<8x128xf32>
    %30 = vector.multi_reduction <add>, %29, %cst_12 [0] : vector<2x8x128xf32> to vector<8x128xf32>
    %31 = arith.addf %28, %30 : vector<8x128xf32>
    %c0_13 = arith.constant 0 : index
    %c0_14 = arith.constant 0 : index
    %32 = vector.load %arg9[%c0_13, %c0_14] : memref<8x128xf32, #tpu.memory_space<vmem>>, vector<8x128xf32>
    tpu.vector_store %arg9[%c0_13, %c0_14], %31 {strides = array<i32>} : memref<8x128xf32, #tpu.memory_space<vmem>>, vector<8x128xf32>,
    %c1_i32 = arith.constant 1 : i32
    %c0_i32_15 = arith.constant 0 : i32
    %33 = arith.cmpi eq, %arg1, %c0_i32_15 : i32
    %34 = arith.extui %33 : i1 to i32
    %c0_i32_16 = arith.constant 0 : i32
    %35 = arith.cmpi ne, %34, %c0_i32_16 : i32
    scf.if %35 {
      %c0_17 = arith.constant 0 : index
      %c0_18 = arith.constant 0 : index
      %36 = vector.load %arg8[%c0_17, %c0_18] : memref<8x128xf32, #tpu.memory_space<vmem>>, vector<8x128xf32>
      %c0_19 = arith.constant 0 : index
      %c0_20 = arith.constant 0 : index
      %c0_21 = arith.constant 0 : index
      %37 = vector.load %arg7[%c0_19, %c0_20, %c0_21] : memref<2x8x128xf32, #tpu.memory_space<vmem>>, vector<1x8x128xf32>
      %38 = vector.shape_cast %37 : vector<1x8x128xf32> to vector<8x128xf32>
      %39 = vector.shape_cast %36 : vector<8x128xf32> to vector<1x8x128xf32>
      tpu.vector_store %arg7[%c0_19, %c0_20, %c0_21], %39 {strides = array<i32>} : memref<2x8x128xf32, #tpu.memory_space<vmem>>, vector<1x8x128xf32>,
      %c0_22 = arith.constant 0 : index
      %c0_23 = arith.constant 0 : index
      %40 = vector.load %arg9[%c0_22, %c0_23] : memref<8x128xf32, #tpu.memory_space<vmem>>, vector<8x128xf32>
      %c1 = arith.constant 1 : index
      %c0_24 = arith.constant 0 : index
      %c0_25 = arith.constant 0 : index
      %41 = vector.load %arg7[%c1, %c0_24, %c0_25] : memref<2x8x128xf32, #tpu.memory_space<vmem>>, vector<1x8x128xf32>
      %42 = vector.shape_cast %41 : vector<1x8x128xf32> to vector<8x128xf32>
      %43 = vector.shape_cast %40 : vector<8x128xf32> to vector<1x8x128xf32>
      tpu.vector_store %arg7[%c1, %c0_24, %c0_25], %43 {strides = array<i32>} : memref<2x8x128xf32, #tpu.memory_space<vmem>>, vector<1x8x128xf32>,
    } else {
    }
    return
  }
  func.func @transform_0(%arg0: i32, %arg1: i32) -> (i32, i32) {
    %c1_i32 = arith.constant 1 : i32
    %0 = arith.muli %arg0, %c1_i32 : i32
    %1 = arith.addi %0, %arg1 : i32
    %c0_i32 = arith.constant 0 : i32
    %c0_i32_0 = arith.constant 0 : i32
    return %1, %c0_i32 : i32, i32
  }
  func.func @transform_1(%arg0: i32, %arg1: i32) -> (i32, i32) {
    %c1_i32 = arith.constant 1 : i32
    %0 = arith.muli %arg0, %c1_i32 : i32
    %1 = arith.addi %0, %arg1 : i32
    %c0_i32 = arith.constant 0 : i32
    %c0_i32_0 = arith.constant 0 : i32
    return %1, %c0_i32 : i32, i32
  }
  func.func @transform_2(%arg0: i32, %arg1: i32) -> (i32, i32) {
    %c1_i32 = arith.constant 1 : i32
    %0 = arith.muli %arg0, %c1_i32 : i32
    %1 = arith.addi %0, %arg1 : i32
    %c0_i32 = arith.constant 0 : i32
    %c0_i32_0 = arith.constant 0 : i32
    return %1, %c0_i32 : i32, i32
  }
  func.func @transform_3(%arg0: i32, %arg1: i32) -> (i32, i32) {
    %c1_i32 = arith.constant 1 : i32
    %0 = arith.muli %arg0, %c1_i32 : i32
    %1 = arith.addi %0, %arg1 : i32
    %c0_i32 = arith.constant 0 : i32
    %c0_i32_0 = arith.constant 0 : i32
    return %1, %c0_i32 : i32, i32
  }
  func.func @transform_4(%arg0: i32, %arg1: i32) -> (i32, i32) {
    %c1_i32 = arith.constant 1 : i32
    %0 = arith.muli %arg0, %c1_i32 : i32
    %1 = arith.addi %0, %arg1 : i32
    %c0_i32 = arith.constant 0 : i32
    %c0_i32_0 = arith.constant 0 : i32
    return %1, %c0_i32 : i32, i32
  }
  func.func @transform_5(%arg0: i32, %arg1: i32) -> (i32, i32, i32) {
    %c0_i32 = arith.constant 0 : i32
    %c0_i32_0 = arith.constant 0 : i32
    %c0_i32_1 = arith.constant 0 : i32
    return %c0_i32, %arg0, %c0_i32_0 : i32, i32, i32
  }
}

</mosaic_0001>

<bundles_post_ra>
// kernel: tpu_custom_call.1
= control target key start
LH: loop header
LB: loop body
LE: loop exit
PB: predicated region body
PF: predicated region fallthrough
CT: control target
= control target key end

     0   :  { %10 = vsyncpa [#allocation5], 0  ;;  %s432_s0 = inlined_call_operand.hbm [shape: f32[16,128], index: 0, kind: input, shape index: {}]   ;;  %s433_s1 = inlined_call_operand.hbm [shape: f32[16,128], index: 1, kind: input, shape index: {}]   ;;  %s434_s2 = inlined_call_operand.hbm [shape: f32[16,128], index: 2, kind: input, shape index: {}]   ;;  %s435_s3 = inlined_call_operand.hbm [shape: f32[16,128], index: 3, kind: input, shape index: {}]   ;;  %s436_s4 = inlined_call_operand.hbm [shape: f32[16,128], index: 4, kind: input, shape index: {}]   ;;  %s437_s5 = inlined_call_operand.hbm [shape: f32[2,8,128], index: 5, kind: output, shape index: {}]  }
   0x1   :  { %11 = vsyncpa [#allocation8], 0 }
   0x2   :  { %12 = vsyncpa [#allocation11], 0 }
   0x3   :  { %13 = vsyncpa [#allocation6], 0  ;;  %s39_s20 = sshll.u32 %s433_s1, 4  ;;  %s358_s21 = smov [#allocation7]   ;;  %s40_s20 = int_to_ptr.hbm [resolvable:$true] %s39_s20 }
   0x4   :  { %s41_s22 = sshll.u32 %s358_s21, 4  ;;  %s73_s25 = sshll.u32 %s435_s3, 4  ;;  %s42_s22 = int_to_ptr.vmem [resolvable:$true] %s41_s22  ;;  %s74_s25 = int_to_ptr.hbm [resolvable:$true] %s73_s25 }
   0x5   :  { %s359_s26 = smov 128   ;;  %s360_s27 = smov 8  }
   0x6   :  { %47 = dma.hbm_to_vmem [thread:$0]  %s40_s20, 256, %s42_s22, [#allocation8], %s359_s26, %s359_s26, %s360_s27  }
   0x7   :  { %s361_s28 = smov [#allocation10]   ;;  %s22_s1 = sshll.u32 %s432_s0, 4  ;;  %s23_s1 = int_to_ptr.hbm [resolvable:$true] %s22_s1 }
   0x8   :  { %s75_s29 = sshll.u32 %s361_s28, 4  ;;  %s56_s8 = sshll.u32 %s434_s2, 4  ;;  %s76_s29 = int_to_ptr.vmem [resolvable:$true] %s75_s29  ;;  %s57_s8 = int_to_ptr.hbm [resolvable:$true] %s56_s8 }
   0x9   :  { %81 = dma.hbm_to_vmem [thread:$0]  %s74_s25, 256, %s76_s29, [#allocation11], %s359_s26, %s359_s26, %s360_s27  }
   0xa   :  { %s362_s9 = smov [#allocation4]   ;;  %s363_s11 = smov [#allocation9]  }
   0xb   :  { %s24_s10 = sshll.u32 %s362_s9, 4  ;;  %s58_s0 = sshll.u32 %s363_s11, 4  ;;  %s25_s10 = int_to_ptr.vmem [resolvable:$true] %s24_s10  ;;  %s59_s0 = int_to_ptr.vmem [resolvable:$true] %s58_s0 }
   0xc   :  { %30 = dma.hbm_to_vmem [thread:$0]  %s23_s1, 256, %s25_s10, [#allocation5], %s359_s26, %s359_s26, %s360_s27  }
   0xd   :  { %s90_s14 = sshll.u32 %s436_s4, 4  ;;  %s364_s2 = smov [#allocation12]   ;;  %s91_s14 = int_to_ptr.hbm [resolvable:$true] %s90_s14 }
   0xe   :  { %64 = dma.hbm_to_vmem [thread:$0]  %s57_s8, 256, %s59_s0, [#allocation8], %s359_s26, %s359_s26, %s360_s27  }
   0xf   :  { %s92_s15 = sshll.u32 %s364_s2, 4  ;;  %s93_s15 = int_to_ptr.vmem [resolvable:$true] %s92_s15 }
  0x10   :  { %98 = dma.hbm_to_vmem [thread:$0]  %s91_s14, 256, %s93_s15, [#allocation11], %s359_s26, %s359_s26, %s360_s27  }
  0x11   :  { %350 = dma.done.wait [#allocation5], 256  }
  0x12   :  { %351 = vsyncadd [#allocation5], 4294967040 }
  0x13   :  { %352 = dma.done.wait [#allocation8], 512  }
  0x14   :  { %353 = vsyncadd [#allocation8], 4294966784 }
  0x15   :  { %354 = dma.done.wait [#allocation11], 512  }
  0x16   :  { %355 = vsyncadd [#allocation11], 4294966784  ;;  %v135_v0 = vld [vmem:[#allocation9] sm:$0xff]  ;;  %v136_v1 = vld [vmem:[#allocation9 + $0x8] sm:$0xff]  ;;  %s365_s4 = smov [#allocation13]   ;;  %s183_s19 = sshll.u32 %s437_s5, 4  ;;  %s184_s19 = int_to_ptr.hbm [resolvable:$true] %s183_s19 }
  0x17   :  { %v137_v2 = vld [vmem:[#allocation4] sm:$0xff]  ;;  %v138_v3 = vld [vmem:[#allocation4 + $0x8] sm:$0xff]  ;;  %v141_v4 = vld [vmem:[#allocation10] sm:$0xff]  ;;  %s181_s16 = sshll.u32 %s365_s4, 4  ;;  %s182_s16 = int_to_ptr.vmem [resolvable:$true] %s181_s16 }
  0x18   :  { %v142_v5 = vld [vmem:[#allocation10 + $0x8] sm:$0xff]  ;;  %v145_v6 = vmul.f32 %v141_v4, %v135_v0  ;;  %v147_v8 = vmul.f32 %v141_v4, %v137_v2  ;;  %v139_v10 = vld [vmem:[#allocation7] sm:$0xff]  ;;  %v143_v12 = vld [vmem:[#allocation12] sm:$0xff] }
  0x19   :  { %v146_v7 = vmul.f32 %v142_v5, %v136_v1  ;;  %v148_v9 = vmul.f32 %v142_v5, %v138_v3  ;;  %v140_v11 = vld [vmem:[#allocation7 + $0x8] sm:$0xff]  ;;  %v144_v13 = vld [vmem:[#allocation12 + $0x8] sm:$0xff]  ;;  %v153_v14 = vmul.f32 %v143_v12, %v135_v0  ;;  %v155_v15 = vmul.f32 %v143_v12, %v139_v10 }
  0x1a   :  { %v149_v16 = vsub.f32 %v145_v6, %v147_v8  ;;  %v154_v18 = vmul.f32 %v144_v13, %v136_v1  ;;  %v156_v19 = vmul.f32 %v144_v13, %v140_v11 }
  0x1b   :  { %v150_v17 = vsub.f32 %v146_v7, %v148_v9  ;;  %v157_v20 = vsub.f32 %v153_v14, %v155_v15 }
  0x1c   :  { %v151_v21 = vand.u32 2147483647, %v149_v16  ;;  %v158_v23 = vsub.f32 %v154_v18, %v156_v19 }
  0x1d   :  { %v152_v22 = vand.u32 2147483647, %v150_v17  ;;  %v159_v24 = vand.u32 2147483647, %v157_v20 }
  0x1e   :  { %v160_v26 = vand.u32 2147483647, %v158_v23 }
  0x1f   :  { %v162_v25 = vadd.f32 %v152_v22, %v151_v21 }
  0x20   :  { %v166_v27 = vadd.f32 %v160_v26, %v159_v24 }
  0x21   :  { %173 = vst [vmem:[#allocation13] sm:$0xff] %v162_v25 }
  0x22   :  { %176 = vst [vmem:[#allocation13 + $0x8] sm:$0xff] %v166_v27 }
  0x23   :  { %189 = dma.vmem_to_hbm [thread:$0]  %s182_s16, 256, %s184_s19, [#allocation6], %s359_s26, %s359_s26, %s360_s27  }
  0x24   :  { %356 = dma.done.wait [#allocation6], 256  }
  0x25   :  { %357 = vsyncadd [#allocation6], 4294967040 }
  0x26   :  { %194 = vsyncpa [#allocation5], 1 }
  0x27   :  { %195 = vsyncpa [#allocation8], 1 }
  0x28   :  { %196 = vsyncpa [#allocation11], 1 }
  0x29   :  { %197 = vsyncpa [#allocation6], 1 }

</bundles_post_ra>
